<compile_context>
chip_gen: v6e
topology: v6e:2x2x1
jax: 0.10.0
libtpu: 0.0.40
codegen_flags: <defaults>
</compile_context>

<pallas_src>
import functools

import numpy as np
import jax
import jax.numpy as jnp
from jax import lax
from jax.experimental import pallas as pl
from jax.experimental.pallas import tpu as pltpu

_NEG = -3.0e38   # finite "-inf" for max-pool padding.  Plain Python float: a
                 # module-level jnp scalar would be captured as a kernel const.
_BLK_NC = 8      # sublane-aligned block over the fused (N*C) axis


def _partial_avg_kernel(snow_ref, mask_ref, out_ref, *, width, max_trips):
    blk_nc, hw = snow_ref.shape

    # ---- loop-invariant index maps & boundary masks (built once) -----------
    flat = lax.broadcasted_iota(jnp.int32, (blk_nc, hw), 1)
    if (width & (width - 1)) == 0:                    # power-of-two fast path
        col = jnp.bitwise_and(flat, width - 1)
        row = jnp.right_shift(flat, width.bit_length() - 1)
    else:
        col = flat % width
        row = flat // width

    # Flat shifts for the separable 3x3 stencil: +/-1 column, +/-1 row.
    s_xa, s_xb = 1 % hw, (hw - 1) % hw
    s_ya, s_yb = width % hw, (hw - width) % hw

    def neighbor_ok(shift, want_drow, want_dcol):
        # True where pltpu.roll(x, shift) brings a genuine neighbour to this
        # position.  Built with the SAME roll primitive/shift as the data taps,
        # so it is robust to the roll direction convention and handles row /
        # image wrap-around exactly.
        r2 = pltpu.roll(row, shift, axis=1)
        c2 = pltpu.roll(col, shift, axis=1)
        return (jnp.abs(r2 - row) == want_drow) & (jnp.abs(c2 - col) == want_dcol)

    ok_xa = neighbor_ok(s_xa, 0, 1)
    ok_xb = neighbor_ok(s_xb, 0, 1)
    ok_ya = neighbor_ok(s_ya, 1, 0)
    ok_yb = neighbor_ok(s_yb, 1, 0)

    def tap(x, shift, ok, fill):
        return jnp.where(ok, pltpu.roll(x, shift, axis=1), fill)

    def box3(x, fill, op):
        # Separable 3x3 stencil with zero / "-inf" padding: 6 taps instead of 9.
        h = op(op(x, tap(x, s_xa, ok_xa, fill)), tap(x, s_xb, ok_xb, fill))
        return op(op(h, tap(h, s_ya, ok_ya, fill)), tap(h, s_yb, ok_yb, fill))

    def step(snow, mask):
        # One iteration of the PyTorch do-while body, epilogue folded:
        #   snow' = snow                                  where mask != 0
        #         = 0                                     where conv_m == 0
        #         = 0.6*max_get + 0.4*conv_sm/conv_m      otherwise
        conv_sm = box3(snow * mask, 0.0, jnp.add)     # snow_conv(snow * mask)
        conv_m = box3(mask, 0.0, jnp.add)             # mask_conv(mask)
        max_get = box3(snow, _NEG, jnp.maximum)       # MaxPool2d(3, pad=1, stride=1)

        holes = conv_m == 0.0                          # update_holes
        # EUP reciprocal instead of the multi-op VALU divide chain.  approx=False
        # keeps it exact: the value feeds back through the iterative update.
        out = conv_sm * pl.reciprocal(jnp.where(holes, 1.0, conv_m), approx=False)
        blend = 0.6 * max_get + 0.4 * out
        new_snow = jnp.where(mask != 0.0, snow, jnp.where(holes, 0.0, blend))
        new_mask = jnp.where(holes, 0.0, 1.0)
        return new_snow, new_mask, conv_m

    def cond(carry):
        it, unresolved, _, _ = carry
        return (it < max_trips) & (unresolved > 0)

    def body(carry):
        it, _, snow, mask = carry
        # Two iterations per trip: once converged the body is an exact no-op,
        # so checking termination every other iteration is numerically free and
        # halves the reduce->scalar->branch serial chain per computed iteration.
        snow, mask, _ = step(snow, mask)
        snow, mask, conv_m = step(snow, mask)
        unresolved = (jnp.min(conv_m) == 0.0).astype(jnp.int32)
        return it + 1, unresolved, snow, mask

    # State stays vreg/VMEM resident inside one early-exiting while loop; HBM is
    # touched exactly once on the way in and once on the way out.
    # TODO(synk): an (n, c) slice with no known pixel never terminates in the
    # PyTorch reference; here we cap at ~H+W iterations instead of hanging.
    _, _, snow_f, _ = lax.while_loop(
        cond, body, (np.int32(0), np.int32(1), snow_ref[...], mask_ref[...]))
    out_ref[...] = snow_f


def _build_call(nc_pad, hw, width, max_trips):
    kernel = functools.partial(_partial_avg_kernel, width=width, max_trips=max_trips)
    return pl.pallas_call(
        kernel,
        grid=(nc_pad // _BLK_NC,),
        in_specs=[pl.BlockSpec((_BLK_NC, hw), lambda i: (i, 0)),
                  pl.BlockSpec((_BLK_NC, hw), lambda i: (i, 0))],
        out_specs=pl.BlockSpec((_BLK_NC, hw), lambda i: (i, 0)),
        out_shape=jax.ShapeDtypeStruct((nc_pad, hw), jnp.float32),
        # Blocks (groups of 8 (n,c) slices) are fully independent: megacore
        # sharding on v7x and per-block early exit instead of a global flag.
        compiler_params=pltpu.CompilerParams(
            dimension_semantics=("parallel",)),
    )


@jax.jit
def partial_avg_forward(snow, mask):
    n, c, h, w = snow.shape
    if h < 3 or w < 3:
        # Degenerate H/W == 2 would make the two vertical (horizontal) roll taps
        # coincide and double-count a neighbour vs. the zero-padded reference.
        raise ValueError("partial_avg Pallas kernel requires H >= 3 and W >= 3")
    nc, hw = n * c, h * w
    nc_pad = ((nc + _BLK_NC - 1) // _BLK_NC) * _BLK_NC
    snow2 = snow.astype(jnp.float32).reshape(nc, hw)
    mask2 = mask.astype(jnp.float32).reshape(nc, hw)
    if nc_pad != nc:
        # Padded rows use mask=1 / snow=0: they converge immediately and never
        # hold their block's termination flag.
        pad = nc_pad - nc
        snow2 = jnp.concatenate([snow2, jnp.zeros((pad, hw), jnp.float32)], axis=0)
        mask2 = jnp.concatenate([mask2, jnp.ones((pad, hw), jnp.float32)], axis=0)
    # The known-pixel front dilates by >=1 (Chebyshev) per iteration, so H + W
    # iterations are a safe static bound; each while trip runs 2 iterations.
    max_trips = (h + w + 1) // 2 + 1
    out = _build_call(nc_pad, hw, w, max_trips)(snow2, mask2)
    return out[:nc].reshape(n, c, h, w).astype(snow.dtype)


# ------------------------- pure-numpy reference ---------------------------
def _ref_partial_avg(snow, mask):
    snow = np.array(snow, dtype=np.float32)
    mask = np.array(mask, dtype=np.float32)
    N, C, H, W = snow.shape

    def windows(x, fill):
        p = np.pad(x, ((0, 0), (0, 0), (1, 1), (1, 1)), constant_values=fill)
        return np.stack(
            [p[:, :, 1 + dy:1 + dy + H, 1 + dx:1 + dx + W]
             for dy in (-1, 0, 1) for dx in (-1, 0, 1)], axis=0)

    while True:
        max_get = windows(snow, -np.inf).max(axis=0)
        conv_sm = windows(snow * mask, 0.0).sum(axis=0)
        conv_m = windows(mask, 0.0).sum(axis=0)
        pre_mask = (mask != 0).astype(np.float32)
        holes = conv_m == 0
        mask_sum = np.where(holes, 1.0, conv_m)
        out = np.where(holes, 0.0, conv_sm / mask_sum)
        new_mask = (~holes).astype(np.float32)
        temp = 0.6 * max_get * (1 - pre_mask) + 0.4 * out * (1 - pre_mask)
        snow = snow * pre_mask + temp * new_mask
        mask = new_mask
        if holes.sum() == 0:
            break
    return snow


if __name__ == "__main__":
    key = jax.random.PRNGKey(0)
    k1, k2 = jax.random.split(key)

    N, C, H, W = 2, 3, 16, 16          # conv() is hard-wired to 3 channels
    snow = jax.random.normal(k1, (N, C, H, W), dtype=jnp.float32)
    mask = (jax.random.uniform(k2, (N, C, H, W)) > 0.4).astype(jnp.float32)
    # Every (n, c) slice needs at least one known pixel or the loop never ends.
    mask = mask.at[:, :, 0, 0].set(1.0)

    result = jax.block_until_ready(partial_avg_forward(snow, mask))

    ref = _ref_partial_avg(snow, mask)
    np.testing.assert_allclose(np.asarray(result), ref, rtol=1e-4, atol=1e-4)

    print("KERNEL_OK")
</pallas_src>

<mosaic_0001>
module attributes {stable_mosaic.version = 11 : i64} {
  func.func @_partial_avg_kernel(%arg0: i32, %arg1: memref<8x256xf32, #tpu.memory_space<vmem>>, %arg2: memref<8x256xf32, #tpu.memory_space<vmem>>, %arg3: memref<8x256xf32, #tpu.memory_space<vmem>>) attributes {dimension_semantics = [#tpu.dimension_semantics<parallel>], iteration_bounds = array<i64: 1>, scalar_prefetch = 0 : i64, scratch_operands = 0 : i64, tpu.core_type = #tpu.core_type<tc>, window_params = [{transform_indices = @transform_0, window_bounds = array<i64: 8, 256>}, {transform_indices = @transform_1, window_bounds = array<i64: 8, 256>}, {transform_indices = @transform_2, window_bounds = array<i64: 8, 256>}]} {
    %0 = tpu.iota {dimensions = array<i32: 1>} : vector<8x256xi32>
    %c15_i32 = arith.constant 15 : i32
    %1 = vector.broadcast %c15_i32 : i32 to vector<8x256xi32>
    %2 = arith.andi %0, %1 : vector<8x256xi32>
    %c4_i32 = arith.constant 4 : i32
    %3 = vector.broadcast %c4_i32 : i32 to vector<8x256xi32>
    %4 = arith.shrsi %0, %3 : vector<8x256xi32>
    %c1_i32 = arith.constant 1 : i32
    %5 = tpu.dynamic_rotate %4 by %c1_i32 dim 1 : vector<8x256xi32>, i32 -> vector<8x256xi32>
    %c1_i32_0 = arith.constant 1 : i32
    %6 = tpu.dynamic_rotate %2 by %c1_i32_0 dim 1 : vector<8x256xi32>, i32 -> vector<8x256xi32>
    %7 = arith.subi %5, %4 : vector<8x256xi32>
    %8 = math.absi %7 : vector<8x256xi32>
    %c0_i32 = arith.constant 0 : i32
    %9 = vector.broadcast %c0_i32 : i32 to vector<8x256xi32>
    %10 = arith.cmpi eq, %8, %9 : vector<8x256xi32>
    %11 = arith.subi %6, %2 : vector<8x256xi32>
    %12 = math.absi %11 : vector<8x256xi32>
    %c1_i32_1 = arith.constant 1 : i32
    %13 = vector.broadcast %c1_i32_1 : i32 to vector<8x256xi32>
    %14 = arith.cmpi eq, %12, %13 : vector<8x256xi32>
    %15 = arith.andi %10, %14 : vector<8x256xi1>
    %c255_i32 = arith.constant 255 : i32
    %16 = tpu.dynamic_rotate %4 by %c255_i32 dim 1 : vector<8x256xi32>, i32 -> vector<8x256xi32>
    %c255_i32_2 = arith.constant 255 : i32
    %17 = tpu.dynamic_rotate %2 by %c255_i32_2 dim 1 : vector<8x256xi32>, i32 -> vector<8x256xi32>
    %18 = arith.subi %16, %4 : vector<8x256xi32>
    %19 = math.absi %18 : vector<8x256xi32>
    %c0_i32_3 = arith.constant 0 : i32
    %20 = vector.broadcast %c0_i32_3 : i32 to vector<8x256xi32>
    %21 = arith.cmpi eq, %19, %20 : vector<8x256xi32>
    %22 = arith.subi %17, %2 : vector<8x256xi32>
    %23 = math.absi %22 : vector<8x256xi32>
    %c1_i32_4 = arith.constant 1 : i32
    %24 = vector.broadcast %c1_i32_4 : i32 to vector<8x256xi32>
    %25 = arith.cmpi eq, %23, %24 : vector<8x256xi32>
    %26 = arith.andi %21, %25 : vector<8x256xi1>
    %c16_i32 = arith.constant 16 : i32
    %27 = tpu.dynamic_rotate %4 by %c16_i32 dim 1 : vector<8x256xi32>, i32 -> vector<8x256xi32>
    %c16_i32_5 = arith.constant 16 : i32
    %28 = tpu.dynamic_rotate %2 by %c16_i32_5 dim 1 : vector<8x256xi32>, i32 -> vector<8x256xi32>
    %29 = arith.subi %27, %4 : vector<8x256xi32>
    %30 = math.absi %29 : vector<8x256xi32>
    %c1_i32_6 = arith.constant 1 : i32
    %31 = vector.broadcast %c1_i32_6 : i32 to vector<8x256xi32>
    %32 = arith.cmpi eq, %30, %31 : vector<8x256xi32>
    %33 = arith.subi %28, %2 : vector<8x256xi32>
    %34 = math.absi %33 : vector<8x256xi32>
    %c0_i32_7 = arith.constant 0 : i32
    %35 = vector.broadcast %c0_i32_7 : i32 to vector<8x256xi32>
    %36 = arith.cmpi eq, %34, %35 : vector<8x256xi32>
    %37 = arith.andi %32, %36 : vector<8x256xi1>
    %c240_i32 = arith.constant 240 : i32
    %38 = tpu.dynamic_rotate %4 by %c240_i32 dim 1 : vector<8x256xi32>, i32 -> vector<8x256xi32>
    %c240_i32_8 = arith.constant 240 : i32
    %39 = tpu.dynamic_rotate %2 by %c240_i32_8 dim 1 : vector<8x256xi32>, i32 -> vector<8x256xi32>
    %40 = arith.subi %38, %4 : vector<8x256xi32>
    %41 = math.absi %40 : vector<8x256xi32>
    %c1_i32_9 = arith.constant 1 : i32
    %42 = vector.broadcast %c1_i32_9 : i32 to vector<8x256xi32>
    %43 = arith.cmpi eq, %41, %42 : vector<8x256xi32>
    %44 = arith.subi %39, %2 : vector<8x256xi32>
    %45 = math.absi %44 : vector<8x256xi32>
    %c0_i32_10 = arith.constant 0 : i32
    %46 = vector.broadcast %c0_i32_10 : i32 to vector<8x256xi32>
    %47 = arith.cmpi eq, %45, %46 : vector<8x256xi32>
    %48 = arith.andi %43, %47 : vector<8x256xi1>
    %c0 = arith.constant 0 : index
    %c0_11 = arith.constant 0 : index
    %49 = vector.load %arg1[%c0, %c0_11] : memref<8x256xf32, #tpu.memory_space<vmem>>, vector<8x256xf32>
    %c0_12 = arith.constant 0 : index
    %c0_13 = arith.constant 0 : index
    %50 = vector.load %arg2[%c0_12, %c0_13] : memref<8x256xf32, #tpu.memory_space<vmem>>, vector<8x256xf32>
    %c0_i32_14 = arith.constant 0 : i32
    %c1_i32_15 = arith.constant 1 : i32
    %51:4 = scf.while (%arg4 = %c0_i32_14, %arg5 = %c1_i32_15, %arg6 = %49, %arg7 = %50) : (i32, i32, vector<8x256xf32>, vector<8x256xf32>) -> (i32, i32, vector<8x256xf32>, vector<8x256xf32>) {
      %c17_i32 = arith.constant 17 : i32
      %53 = arith.cmpi slt, %arg4, %c17_i32 : i32
      %c0_i32_18 = arith.constant 0 : i32
      %54 = arith.cmpi sgt, %arg5, %c0_i32_18 : i32
      %55 = arith.andi %53, %54 : i1
      scf.condition(%55) %arg4, %arg5, %arg6, %arg7 : i32, i32, vector<8x256xf32>, vector<8x256xf32>
    } do {
    ^bb0(%arg4: i32, %arg5: i32, %arg6: vector<8x256xf32>, %arg7: vector<8x256xf32>):
      %53 = arith.mulf %arg6, %arg7 : vector<8x256xf32>
      %c1_i32_18 = arith.constant 1 : i32
      %54 = tpu.dynamic_rotate %53 by %c1_i32_18 dim 1 : vector<8x256xf32>, i32 -> vector<8x256xf32>
      %cst = arith.constant 0.000000e+00 : f32
      %55 = vector.broadcast %cst : f32 to vector<8x256xf32>
      %56 = arith.select %15, %54, %55 : vector<8x256xi1>, vector<8x256xf32>
      %57 = arith.addf %53, %56 : vector<8x256xf32>
      %c255_i32_19 = arith.constant 255 : i32
      %58 = tpu.dynamic_rotate %53 by %c255_i32_19 dim 1 : vector<8x256xf32>, i32 -> vector<8x256xf32>
      %cst_20 = arith.constant 0.000000e+00 : f32
      %59 = vector.broadcast %cst_20 : f32 to vector<8x256xf32>
      %60 = arith.select %26, %58, %59 : vector<8x256xi1>, vector<8x256xf32>
      %61 = arith.addf %57, %60 : vector<8x256xf32>
      %c16_i32_21 = arith.constant 16 : i32
      %62 = tpu.dynamic_rotate %61 by %c16_i32_21 dim 1 : vector<8x256xf32>, i32 -> vector<8x256xf32>
      %cst_22 = arith.constant 0.000000e+00 : f32
      %63 = vector.broadcast %cst_22 : f32 to vector<8x256xf32>
      %64 = arith.select %37, %62, %63 : vector<8x256xi1>, vector<8x256xf32>
      %65 = arith.addf %61, %64 : vector<8x256xf32>
      %c240_i32_23 = arith.constant 240 : i32
      %66 = tpu.dynamic_rotate %61 by %c240_i32_23 dim 1 : vector<8x256xf32>, i32 -> vector<8x256xf32>
      %cst_24 = arith.constant 0.000000e+00 : f32
      %67 = vector.broadcast %cst_24 : f32 to vector<8x256xf32>
      %68 = arith.select %48, %66, %67 : vector<8x256xi1>, vector<8x256xf32>
      %69 = arith.addf %65, %68 : vector<8x256xf32>
      %c1_i32_25 = arith.constant 1 : i32
      %70 = tpu.dynamic_rotate %arg7 by %c1_i32_25 dim 1 : vector<8x256xf32>, i32 -> vector<8x256xf32>
      %cst_26 = arith.constant 0.000000e+00 : f32
      %71 = vector.broadcast %cst_26 : f32 to vector<8x256xf32>
      %72 = arith.select %15, %70, %71 : vector<8x256xi1>, vector<8x256xf32>
      %73 = arith.addf %arg7, %72 : vector<8x256xf32>
      %c255_i32_27 = arith.constant 255 : i32
      %74 = tpu.dynamic_rotate %arg7 by %c255_i32_27 dim 1 : vector<8x256xf32>, i32 -> vector<8x256xf32>
      %cst_28 = arith.constant 0.000000e+00 : f32
      %75 = vector.broadcast %cst_28 : f32 to vector<8x256xf32>
      %76 = arith.select %26, %74, %75 : vector<8x256xi1>, vector<8x256xf32>
      %77 = arith.addf %73, %76 : vector<8x256xf32>
      %c16_i32_29 = arith.constant 16 : i32
      %78 = tpu.dynamic_rotate %77 by %c16_i32_29 dim 1 : vector<8x256xf32>, i32 -> vector<8x256xf32>
      %cst_30 = arith.constant 0.000000e+00 : f32
      %79 = vector.broadcast %cst_30 : f32 to vector<8x256xf32>
      %80 = arith.select %37, %78, %79 : vector<8x256xi1>, vector<8x256xf32>
      %81 = arith.addf %77, %80 : vector<8x256xf32>
      %c240_i32_31 = arith.constant 240 : i32
      %82 = tpu.dynamic_rotate %77 by %c240_i32_31 dim 1 : vector<8x256xf32>, i32 -> vector<8x256xf32>
      %cst_32 = arith.constant 0.000000e+00 : f32
      %83 = vector.broadcast %cst_32 : f32 to vector<8x256xf32>
      %84 = arith.select %48, %82, %83 : vector<8x256xi1>, vector<8x256xf32>
      %85 = arith.addf %81, %84 : vector<8x256xf32>
      %c1_i32_33 = arith.constant 1 : i32
      %86 = tpu.dynamic_rotate %arg6 by %c1_i32_33 dim 1 : vector<8x256xf32>, i32 -> vector<8x256xf32>
      %cst_34 = arith.constant -3.000000e+38 : f32
      %87 = vector.broadcast %cst_34 : f32 to vector<8x256xf32>
      %88 = arith.select %15, %86, %87 : vector<8x256xi1>, vector<8x256xf32>
      %89 = arith.maximumf %arg6, %88 : vector<8x256xf32>
      %c255_i32_35 = arith.constant 255 : i32
      %90 = tpu.dynamic_rotate %arg6 by %c255_i32_35 dim 1 : vector<8x256xf32>, i32 -> vector<8x256xf32>
      %cst_36 = arith.constant -3.000000e+38 : f32
      %91 = vector.broadcast %cst_36 : f32 to vector<8x256xf32>
      %92 = arith.select %26, %90, %91 : vector<8x256xi1>, vector<8x256xf32>
      %93 = arith.maximumf %89, %92 : vector<8x256xf32>
      %c16_i32_37 = arith.constant 16 : i32
      %94 = tpu.dynamic_rotate %93 by %c16_i32_37 dim 1 : vector<8x256xf32>, i32 -> vector<8x256xf32>
      %cst_38 = arith.constant -3.000000e+38 : f32
      %95 = vector.broadcast %cst_38 : f32 to vector<8x256xf32>
      %96 = arith.select %37, %94, %95 : vector<8x256xi1>, vector<8x256xf32>
      %97 = arith.maximumf %93, %96 : vector<8x256xf32>
      %c240_i32_39 = arith.constant 240 : i32
      %98 = tpu.dynamic_rotate %93 by %c240_i32_39 dim 1 : vector<8x256xf32>, i32 -> vector<8x256xf32>
      %cst_40 = arith.constant -3.000000e+38 : f32
      %99 = vector.broadcast %cst_40 : f32 to vector<8x256xf32>
      %100 = arith.select %48, %98, %99 : vector<8x256xi1>, vector<8x256xf32>
      %101 = arith.maximumf %97, %100 : vector<8x256xf32>
      %cst_41 = arith.constant 0.000000e+00 : f32
      %102 = vector.broadcast %cst_41 : f32 to vector<8x256xf32>
      %103 = arith.cmpf oeq, %85, %102 : vector<8x256xf32>
      %cst_42 = arith.constant 1.000000e+00 : f32
      %104 = vector.broadcast %cst_42 : f32 to vector<8x256xf32>
      %105 = arith.select %103, %104, %85 : vector<8x256xi1>, vector<8x256xf32>
      %106 = tpu.reciprocal %105 : vector<8x256xf32> -> vector<8x256xf32>
      %107 = arith.mulf %69, %106 : vector<8x256xf32>
      %cst_43 = arith.constant 6.000000e-01 : f32
      %108 = vector.broadcast %cst_43 : f32 to vector<8x256xf32>
      %109 = arith.mulf %108, %101 : vector<8x256xf32>
      %cst_44 = arith.constant 4.000000e-01 : f32
      %110 = vector.broadcast %cst_44 : f32 to vector<8x256xf32>
      %111 = arith.mulf %110, %107 : vector<8x256xf32>
      %112 = arith.addf %109, %111 : vector<8x256xf32>
      %cst_45 = arith.constant 0.000000e+00 : f32
      %113 = vector.broadcast %cst_45 : f32 to vector<8x256xf32>
      %114 = arith.cmpf one, %arg7, %113 : vector<8x256xf32>
      %cst_46 = arith.constant 0.000000e+00 : f32
      %115 = vector.broadcast %cst_46 : f32 to vector<8x256xf32>
      %116 = arith.select %103, %115, %112 : vector<8x256xi1>, vector<8x256xf32>
      %117 = arith.select %114, %arg6, %116 : vector<8x256xi1>, vector<8x256xf32>
      %cst_47 = arith.constant 0.000000e+00 : f32
      %cst_48 = arith.constant 1.000000e+00 : f32
      %118 = vector.broadcast %cst_47 : f32 to vector<8x256xf32>
      %119 = vector.broadcast %cst_48 : f32 to vector<8x256xf32>
      %120 = arith.select %103, %118, %119 : vector<8x256xi1>, vector<8x256xf32>
      %121 = arith.mulf %117, %120 : vector<8x256xf32>
      %c1_i32_49 = arith.constant 1 : i32
      %122 = tpu.dynamic_rotate %121 by %c1_i32_49 dim 1 : vector<8x256xf32>, i32 -> vector<8x256xf32>
      %cst_50 = arith.constant 0.000000e+00 : f32
      %123 = vector.broadcast %cst_50 : f32 to vector<8x256xf32>
      %124 = arith.select %15, %122, %123 : vector<8x256xi1>, vector<8x256xf32>
      %125 = arith.addf %121, %124 : vector<8x256xf32>
      %c255_i32_51 = arith.constant 255 : i32
      %126 = tpu.dynamic_rotate %121 by %c255_i32_51 dim 1 : vector<8x256xf32>, i32 -> vector<8x256xf32>
      %cst_52 = arith.constant 0.000000e+00 : f32
      %127 = vector.broadcast %cst_52 : f32 to vector<8x256xf32>
      %128 = arith.select %26, %126, %127 : vector<8x256xi1>, vector<8x256xf32>
      %129 = arith.addf %125, %128 : vector<8x256xf32>
      %c16_i32_53 = arith.constant 16 : i32
      %130 = tpu.dynamic_rotate %129 by %c16_i32_53 dim 1 : vector<8x256xf32>, i32 -> vector<8x256xf32>
      %cst_54 = arith.constant 0.000000e+00 : f32
      %131 = vector.broadcast %cst_54 : f32 to vector<8x256xf32>
      %132 = arith.select %37, %130, %131 : vector<8x256xi1>, vector<8x256xf32>
      %133 = arith.addf %129, %132 : vector<8x256xf32>
      %c240_i32_55 = arith.constant 240 : i32
      %134 = tpu.dynamic_rotate %129 by %c240_i32_55 dim 1 : vector<8x256xf32>, i32 -> vector<8x256xf32>
      %cst_56 = arith.constant 0.000000e+00 : f32
      %135 = vector.broadcast %cst_56 : f32 to vector<8x256xf32>
      %136 = arith.select %48, %134, %135 : vector<8x256xi1>, vector<8x256xf32>
      %137 = arith.addf %133, %136 : vector<8x256xf32>
      %c1_i32_57 = arith.constant 1 : i32
      %138 = tpu.dynamic_rotate %120 by %c1_i32_57 dim 1 : vector<8x256xf32>, i32 -> vector<8x256xf32>
      %cst_58 = arith.constant 0.000000e+00 : f32
      %139 = vector.broadcast %cst_58 : f32 to vector<8x256xf32>
      %140 = arith.select %15, %138, %139 : vector<8x256xi1>, vector<8x256xf32>
      %141 = arith.addf %120, %140 : vector<8x256xf32>
      %c255_i32_59 = arith.constant 255 : i32
      %142 = tpu.dynamic_rotate %120 by %c255_i32_59 dim 1 : vector<8x256xf32>, i32 -> vector<8x256xf32>
      %cst_60 = arith.constant 0.000000e+00 : f32
      %143 = vector.broadcast %cst_60 : f32 to vector<8x256xf32>
      %144 = arith.select %26, %142, %143 : vector<8x256xi1>, vector<8x256xf32>
      %145 = arith.addf %141, %144 : vector<8x256xf32>
      %c16_i32_61 = arith.constant 16 : i32
      %146 = tpu.dynamic_rotate %145 by %c16_i32_61 dim 1 : vector<8x256xf32>, i32 -> vector<8x256xf32>
      %cst_62 = arith.constant 0.000000e+00 : f32
      %147 = vector.broadcast %cst_62 : f32 to vector<8x256xf32>
      %148 = arith.select %37, %146, %147 : vector<8x256xi1>, vector<8x256xf32>
      %149 = arith.addf %145, %148 : vector<8x256xf32>
      %c240_i32_63 = arith.constant 240 : i32
      %150 = tpu.dynamic_rotate %145 by %c240_i32_63 dim 1 : vector<8x256xf32>, i32 -> vector<8x256xf32>
      %cst_64 = arith.constant 0.000000e+00 : f32
      %151 = vector.broadcast %cst_64 : f32 to vector<8x256xf32>
      %152 = arith.select %48, %150, %151 : vector<8x256xi1>, vector<8x256xf32>
      %153 = arith.addf %149, %152 : vector<8x256xf32>
      %c1_i32_65 = arith.constant 1 : i32
      %154 = tpu.dynamic_rotate %117 by %c1_i32_65 dim 1 : vector<8x256xf32>, i32 -> vector<8x256xf32>
      %cst_66 = arith.constant -3.000000e+38 : f32
      %155 = vector.broadcast %cst_66 : f32 to vector<8x256xf32>
      %156 = arith.select %15, %154, %155 : vector<8x256xi1>, vector<8x256xf32>
      %157 = arith.maximumf %117, %156 : vector<8x256xf32>
      %c255_i32_67 = arith.constant 255 : i32
      %158 = tpu.dynamic_rotate %117 by %c255_i32_67 dim 1 : vector<8x256xf32>, i32 -> vector<8x256xf32>
      %cst_68 = arith.constant -3.000000e+38 : f32
      %159 = vector.broadcast %cst_68 : f32 to vector<8x256xf32>
      %160 = arith.select %26, %158, %159 : vector<8x256xi1>, vector<8x256xf32>
      %161 = arith.maximumf %157, %160 : vector<8x256xf32>
      %c16_i32_69 = arith.constant 16 : i32
      %162 = tpu.dynamic_rotate %161 by %c16_i32_69 dim 1 : vector<8x256xf32>, i32 -> vector<8x256xf32>
      %cst_70 = arith.constant -3.000000e+38 : f32
      %163 = vector.broadcast %cst_70 : f32 to vector<8x256xf32>
      %164 = arith.select %37, %162, %163 : vector<8x256xi1>, vector<8x256xf32>
      %165 = arith.maximumf %161, %164 : vector<8x256xf32>
      %c240_i32_71 = arith.constant 240 : i32
      %166 = tpu.dynamic_rotate %161 by %c240_i32_71 dim 1 : vector<8x256xf32>, i32 -> vector<8x256xf32>
      %cst_72 = arith.constant -3.000000e+38 : f32
      %167 = vector.broadcast %cst_72 : f32 to vector<8x256xf32>
      %168 = arith.select %48, %166, %167 : vector<8x256xi1>, vector<8x256xf32>
      %169 = arith.maximumf %165, %168 : vector<8x256xf32>
      %cst_73 = arith.constant 0.000000e+00 : f32
      %170 = vector.broadcast %cst_73 : f32 to vector<8x256xf32>
      %171 = arith.cmpf oeq, %153, %170 : vector<8x256xf32>
      %cst_74 = arith.constant 1.000000e+00 : f32
      %172 = vector.broadcast %cst_74 : f32 to vector<8x256xf32>
      %173 = arith.select %171, %172, %153 : vector<8x256xi1>, vector<8x256xf32>
      %174 = tpu.reciprocal %173 : vector<8x256xf32> -> vector<8x256xf32>
      %175 = arith.mulf %137, %174 : vector<8x256xf32>
      %cst_75 = arith.constant 6.000000e-01 : f32
      %176 = vector.broadcast %cst_75 : f32 to vector<8x256xf32>
      %177 = arith.mulf %176, %169 : vector<8x256xf32>
      %cst_76 = arith.constant 4.000000e-01 : f32
      %178 = vector.broadcast %cst_76 : f32 to vector<8x256xf32>
      %179 = arith.mulf %178, %175 : vector<8x256xf32>
      %180 = arith.addf %177, %179 : vector<8x256xf32>
      %cst_77 = arith.constant 0.000000e+00 : f32
      %181 = vector.broadcast %cst_77 : f32 to vector<8x256xf32>
      %182 = arith.cmpf one, %120, %181 : vector<8x256xf32>
      %cst_78 = arith.constant 0.000000e+00 : f32
      %183 = vector.broadcast %cst_78 : f32 to vector<8x256xf32>
      %184 = arith.select %171, %183, %180 : vector<8x256xi1>, vector<8x256xf32>
      %185 = arith.select %182, %117, %184 : vector<8x256xi1>, vector<8x256xf32>
      %cst_79 = arith.constant 0.000000e+00 : f32
      %cst_80 = arith.constant 1.000000e+00 : f32
      %186 = vector.broadcast %cst_79 : f32 to vector<8x256xf32>
      %187 = vector.broadcast %cst_80 : f32 to vector<8x256xf32>
      %188 = arith.select %171, %186, %187 : vector<8x256xi1>, vector<8x256xf32>
      %189 = vector.shape_cast %153 : vector<8x256xf32> to vector<1x8x256xf32>
      %cst_81 = arith.constant dense<0x7F800000> : vector<1xf32>
      %190 = vector.multi_reduction <minimumf>, %189, %cst_81 [1, 2] : vector<1x8x256xf32> to vector<1xf32>
      %191 = vector.shape_cast %190 : vector<1xf32> to vector<1x1x1xf32>
      %192 = vector.extract %191[0, 0, 0] : f32 from vector<1x1x1xf32>
      %cst_82 = arith.constant 0.000000e+00 : f32
      %193 = arith.cmpf oeq, %192, %cst_82 : f32
      %194 = arith.extui %193 : i1 to i32
      %c1_i32_83 = arith.constant 1 : i32
      %195 = arith.addi %arg4, %c1_i32_83 : i32
      scf.yield %195, %194, %185, %188 : i32, i32, vector<8x256xf32>, vector<8x256xf32>
    }
    %c0_16 = arith.constant 0 : index
    %c0_17 = arith.constant 0 : index
    %52 = vector.load %arg3[%c0_16, %c0_17] : memref<8x256xf32, #tpu.memory_space<vmem>>, vector<8x256xf32>
    tpu.vector_store %arg3[%c0_16, %c0_17], %51#2 {strides = array<i32>} : memref<8x256xf32, #tpu.memory_space<vmem>>, vector<8x256xf32>,
    return
  }
  func.func @transform_0(%arg0: i32) -> (i32, i32) {
    %c0_i32 = arith.constant 0 : i32
    %c0_i32_0 = arith.constant 0 : i32
    return %arg0, %c0_i32 : i32, i32
  }
  func.func @transform_1(%arg0: i32) -> (i32, i32) {
    %c0_i32 = arith.constant 0 : i32
    %c0_i32_0 = arith.constant 0 : i32
    return %arg0, %c0_i32 : i32, i32
  }
  func.func @transform_2(%arg0: i32) -> (i32, i32) {
    %c0_i32 = arith.constant 0 : i32
    %c0_i32_0 = arith.constant 0 : i32
    return %arg0, %c0_i32 : i32, i32
  }
}

</mosaic_0001>

<bundles_post_ra>
// kernel: partial_avg_forward.1
= control target key start
LH: loop header
LB: loop body
LE: loop exit
PB: predicated region body
PF: predicated region fallthrough
CT: control target
= control target key end

     0   :  { %v11_v0 = vlaneseq  ;;  %s627_s9 = smov 1   ;;  %s628_s10 = smov 127   ;;  %s1180_s0 = inlined_call_operand.vmem [shape: f32[8,256], index: 0, kind: input, shape index: {}]   ;;  %s1181_s1 = inlined_call_operand.vmem [shape: f32[8,256], index: 1, kind: input, shape index: {}]   ;;  %s1182_s2 = inlined_call_operand.vmem [shape: f32[8,256], index: 2, kind: output, shape index: {}]  }
   0x1   :  { %s629_s11 = smov 16   ;;  %s630_s12 = smov 112   ;;  %v681_v7 = vld [vmem:[%s1180_s0] sm:$0xff]   ;;  %v686_v8 = vld [vmem:[%s1180_s0 + $0x8] sm:$0xff]  }
   0x2   :  { %v651_v1 = vand.u32 127, %v11_v0  ;;  %v691_v9 = vld [vmem:[%s1181_s1] sm:$0xff]   ;;  %v696_v10 = vld [vmem:[%s1181_s1 + $0x8] sm:$0xff]   ;;  %s796_s0 = smov 0  }
   0x4   :  { %v654_v2 = vshra.s32 %v651_v1, 4  ;;  %v657_v3 = vand.u32 15, %v651_v1  ;;  %v13_v4 = vadd.s32 128, %v651_v1  ;;  %vm22_vm0 = vcmp.lt.s32.totalorder %v651_v1, 1 }
   0x5   :  { %vm57_vm1 = vcmp.lt.s32.totalorder %v651_v1, 127  ;;  %vm1183_vm2 = vcmp.lt.s32.totalorder %v651_v1, 16  ;;  %vm127_vm15 = vcmp.lt.s32.totalorder %v651_v1, 112 }
   0x6   :  { %18 = vrot.lane.b32.xlu0 %v654_v2, %s627_s9  ;;  %25 = vrot.lane.b32.xlu1 %v657_v3, %s627_s9  ;;  %v662_v5 = vand.u32 15, %v13_v4  ;;  %v666_v6 = vshra.s32 %v13_v4, 4 }
   0xa   :  { %53 = vrot.lane.b32.xlu0 %v654_v2, %s628_s10  ;;  %27 = vrot.lane.b32.xlu1 %v662_v5, %s627_s9 }
   0xe   :  { %20 = vrot.lane.b32.xlu0 %v666_v6, %s627_s9  ;;  %55 = vrot.lane.b32.xlu1 %v666_v6, %s628_s10 }
  0x12   :  { %60 = vrot.lane.b32.xlu0 %v657_v3, %s628_s10  ;;  %62 = vrot.lane.b32.xlu1 %v662_v5, %s628_s10 }
  0x16   :  { %88 = vrot.lane.b32.xlu0 %v654_v2, %s629_s11  ;;  %90 = vrot.lane.b32.xlu1 %v666_v6, %s629_s11 }
  0x1a   :  { %95 = vrot.lane.b32.xlu0 %v657_v3, %s629_s11  ;;  %97 = vrot.lane.b32.xlu1 %v662_v5, %s629_s11 }
  0x1e   :  { %123 = vrot.lane.b32.xlu0 %v654_v2, %s630_s12  ;;  %125 = vrot.lane.b32.xlu1 %v666_v6, %s630_s12 }
  0x22   :  { %130 = vrot.lane.b32.xlu0 %v657_v3, %s630_s12  ;;  %132 = vrot.lane.b32.xlu1 %v662_v5, %s630_s12 }
  0x78   :  { %v19_v11 = vpop.permute.xlu0 %18  ;;  %v26_v12 = vpop.permute.xlu1 %25 }
  0x7c   :  { %v54_v13 = vpop.permute.xlu0 %53  ;;  %v28_v14 = vpop.permute.xlu1 %27 }
  0x7d   :  { %v29_v15 = vsel %vm22_vm0, %v26_v12, %v28_v14  ;;  %v30_v16 = vsel %vm22_vm0, %v28_v14, %v26_v12 }
  0x7e   :  { %v41_v17 = vsub.s32 %v30_v16, %v657_v3  ;;  %v42_v18 = vsub.s32 %v29_v15, %v662_v5 }
  0x80   :  { %v44_v19 = vsub.s32 0, %v41_v17  ;;  %v47_v20 = vsub.s32 0, %v42_v18  ;;  %v21_v21 = vpop.permute.xlu0 %20  ;;  %v56_v22 = vpop.permute.xlu1 %55 }
  0x81   :  { %v23_v23 = vsel %vm22_vm0, %v19_v11, %v21_v21  ;;  %v24_v24 = vsel %vm22_vm0, %v21_v21, %v19_v11  ;;  %v58_v25 = vsel %vm57_vm1, %v54_v13, %v56_v22  ;;  %v59_v26 = vsel %vm57_vm1, %v56_v22, %v54_v13 }
  0x82   :  { %v31_v27 = vsub.s32 %v24_v24, %v654_v2  ;;  %v32_v28 = vsub.s32 %v23_v23, %v666_v6  ;;  %v504_v29 = vmin.u32 %v44_v19, %v41_v17  ;;  %v66_v30 = vsub.s32 %v58_v25, %v654_v2 }
  0x83   :  { %v67_v31 = vsub.s32 %v59_v26, %v666_v6  ;;  %v505_v32 = vmin.u32 %v47_v20, %v42_v18 }
  0x84   :  { %v34_v33 = vsub.s32 0, %v31_v27  ;;  %v37_v34 = vsub.s32 0, %v32_v28  ;;  %v61_v35 = vpop.permute.xlu0 %60  ;;  %v63_v36 = vpop.permute.xlu1 %62  ;;  %v69_v37 = vsub.s32 0, %v66_v30  ;;  %vm49_vm3 = vcmp.eq.s32.totalorder %v504_v29, 1 }
  0x85   :  { %v72_v38 = vsub.s32 0, %v67_v31  ;;  %v64_v39 = vsel %vm57_vm1, %v61_v35, %v63_v36  ;;  %v65_v40 = vsel %vm57_vm1, %v63_v36, %v61_v35  ;;  %vm50_vm6 = vcmp.eq.s32.totalorder %v505_v32, 1 }
  0x86   :  { %v502_v41 = vmin.u32 %v34_v33, %v31_v27  ;;  %v503_v42 = vmin.u32 %v37_v34, %v32_v28  ;;  %v76_v43 = vsub.s32 %v64_v39, %v657_v3  ;;  %v77_v44 = vsub.s32 %v65_v40, %v662_v5 }
  0x87   :  { %v506_v45 = vmin.u32 %v69_v37, %v66_v30  ;;  %v507_v51 = vmin.u32 %v72_v38, %v67_v31 }
  0x88   :  { %vm39_vm4 = vcmp.eq.s32.totalorder %v502_v41, 0  ;;  %vm40_vm5 = vcmp.eq.s32.totalorder %v503_v42, 0  ;;  %v79_v46 = vsub.s32 0, %v76_v43  ;;  %v82_v47 = vsub.s32 0, %v77_v44  ;;  %v89_v48 = vpop.permute.xlu0 %88  ;;  %v91_v49 = vpop.permute.xlu1 %90 }
  0x89   :  { %vm727_vm7 = vmand %vm39_vm4, %vm49_vm3  ;;  %v93_v52 = vsel %vm1183_vm2, %v89_v48, %v91_v49  ;;  %v94_v53 = vsel %vm1183_vm2, %v91_v49, %v89_v48  ;;  %vm74_vm9 = vcmp.eq.s32.totalorder %v506_v45, 0  ;;  %vm75_vm12 = vcmp.eq.s32.totalorder %v507_v51, 0 }
  0x8a   :  { %vm735_vm8 = vmand %vm40_vm5, %vm50_vm6  ;;  %v508_v55 = vmin.u32 %v79_v46, %v76_v43  ;;  %v509_v56 = vmin.u32 %v82_v47, %v77_v44  ;;  %v101_v57 = vsub.s32 %v94_v53, %v654_v2  ;;  %v102_v58 = vsub.s32 %v93_v52, %v666_v6 }
  0x8c   :  { %vm84_vm10 = vcmp.eq.s32.totalorder %v508_v55, 1  ;;  %vm85_vm11 = vcmp.eq.s32.totalorder %v509_v56, 1  ;;  %v104_v59 = vsub.s32 0, %v101_v57  ;;  %v96_v60 = vpop.permute.xlu0 %95  ;;  %v98_v61 = vpop.permute.xlu1 %97  ;;  %v107_v63 = vsub.s32 0, %v102_v58 }
  0x8d   :  { %vm741_vm13 = vmand %vm74_vm9, %vm84_vm10  ;;  %v99_v0 = vsel %vm1183_vm2, %v96_v60, %v98_v61  ;;  %v100_v4 = vsel %vm1183_vm2, %v98_v61, %v96_v60 }
  0x8e   :  { %vm749_vm14 = vmand %vm75_vm12, %vm85_vm11  ;;  %v111_v12 = vsub.s32 %v100_v4, %v657_v3  ;;  %v112_v13 = vsub.s32 %v99_v0, %v662_v5  ;;  %v510_v14 = vmin.u32 %v104_v59, %v101_v57  ;;  %v511_v19 = vmin.u32 %v107_v63, %v102_v58 }
  0x90   :  { %v114_v15 = vsub.s32 0, %v111_v12  ;;  %v117_v16 = vsub.s32 0, %v112_v13  ;;  %v124_v17 = vpop.permute.xlu0 %123  ;;  %v126_v18 = vpop.permute.xlu1 %125  ;;  %vm109_vm3 = vcmp.eq.s32.totalorder %v510_v14, 1  ;;  %vm110_vm6 = vcmp.eq.s32.totalorder %v511_v19, 1 }
  0x91   :  { %v128_v20 = vsel %vm127_vm15, %v124_v17, %v126_v18  ;;  %v129_v21 = vsel %vm127_vm15, %v126_v18, %v124_v17 }
  0x92   :  { %v512_v22 = vmin.u32 %v114_v15, %v111_v12  ;;  %v513_v23 = vmin.u32 %v117_v16, %v112_v13  ;;  %v136_v24 = vsub.s32 %v128_v20, %v654_v2  ;;  %v137_v25 = vsub.s32 %v129_v21, %v666_v6 }
  0x94   :  { %vm119_vm4 = vcmp.eq.s32.totalorder %v512_v22, 0  ;;  %vm120_vm5 = vcmp.eq.s32.totalorder %v513_v23, 0  ;;  %v139_v26 = vsub.s32 0, %v136_v24  ;;  %v131_v27 = vpop.permute.xlu0 %130  ;;  %v133_v28 = vpop.permute.xlu1 %132  ;;  %v142_v30 = vsub.s32 0, %v137_v25 }
  0x95   :  { %vm762_vm9 = vmand %vm109_vm3, %vm119_vm4  ;;  %v134_v31 = vsel %vm127_vm15, %v131_v27, %v133_v28  ;;  %v135_v2 = vsel %vm127_vm15, %v133_v28, %v131_v27 }
  0x96   :  { %vm770_vm10 = vmand %vm110_vm6, %vm120_vm5  ;;  %v146_v32 = vsub.s32 %v134_v31, %v657_v3  ;;  %v147_v33 = vsub.s32 %v135_v2, %v662_v5  ;;  %v514_v34 = vmin.u32 %v139_v26, %v136_v24  ;;  %v515_v37 = vmin.u32 %v142_v30, %v137_v25 }
  0x98   :  { %v149_v35 = vsub.s32 0, %v146_v32  ;;  %v152_v36 = vsub.s32 0, %v147_v33  ;;  %vm144_vm11 = vcmp.eq.s32.totalorder %v514_v34, 1  ;;  %vm145_vm4 = vcmp.eq.s32.totalorder %v515_v37, 1 }
  0x9a   :  { %v516_v38 = vmin.u32 %v149_v35, %v146_v32  ;;  %v517_v39 = vmin.u32 %v152_v36, %v147_v33 }
  0x9c   :  { %vm154_vm12 = vcmp.eq.s32.totalorder %v516_v38, 0  ;;  %vm155_vm3 = vcmp.eq.s32.totalorder %v517_v39, 0 }
  0x9d   :  { %vm776_vm2 = vmand %vm144_vm11, %vm154_vm12 }
  0x9e   :  { %vm780_vm5 = vmand %vm145_vm4, %vm155_vm3 }
  0x9f LB: > { %s631_s1 = smov 127   ;;  %s632_s21 = smov 1   ;;  %v175_v58 = vmul.f32 %v613_v9, %v621_v7  ;;  %v176_v59 = vmul.f32 %v609_v10, %v617_v8  ;;  %vm1200_vm6 = vcmp.lt.s32.totalorder %v651_v1, 16  ;;  %v635_v27 = vmov 1.0   ;;  %s625_s0 = sphi %s796_s0, %s1213_s0   ;;  %v621_v7 = vphi %v681_v7, %v1212_v7   ;;  %v617_v8 = vphi %v686_v8, %v1211_v8   ;;  %v613_v9 = vphi %v691_v9, %v1210_v9   ;;  %v609_v10 = vphi %v696_v10, %v1067_v10  }
  0xa0   : > { %227 = vrot.lane.b32.xlu1 %v613_v9, %s631_s1  ;;  %217 = vrot.lane.b32.xlu0 %v613_v9, %s632_s21  ;;  %s633_s22 = smov 16   ;;  %s634_s23 = smov 112   ;;  %vm1201_vm11 = vmmov %vm1200_vm6 }
  0xa1   : > { %vm1202_vm4 = vmmov %vm1200_vm6  ;;  %s475_s24 = sadd.s32 1, %s625_s0  }
  0xa2   : > { %p169_p1 = scmp.lt.s32.totalorder %s475_s24, 17  ;;  %s1213_s0 = smov %s475_s24 }
  0xa4   : > { %229 = vrot.lane.b32.xlu1 %v609_v10, %s631_s1  ;;  %219 = vrot.lane.b32.xlu0 %v609_v10, %s632_s21 }
 0x112   : > { %v228_v3 = vpop.permute.xlu1 %227  ;;  %v218_v5 = vpop.permute.xlu0 %217 }
 0x116   : > { %v230_v42 = vpop.permute.xlu1 %229  ;;  %v220_v43 = vpop.permute.xlu0 %219 }
 0x117   : > { %v231_v44 = vsel %vm57_vm1, %v228_v3, %v230_v42  ;;  %v232_v45 = vsel %vm57_vm1, %v230_v42, %v228_v3  ;;  %v221_v46 = vsel %vm22_vm0, %v218_v5, %v220_v43  ;;  %v222_v47 = vsel %vm22_vm0, %v220_v43, %v218_v5 }
 0x118   : > { %v223_v48 = vsel %vm727_vm7, %v222_v47, 0.0  ;;  %v224_v49 = vsel %vm735_vm8, %v221_v46, 0.0  ;;  %v233_v53 = vsel %vm741_vm13, %v231_v44, 0.0  ;;  %v234_v55 = vsel %vm749_vm14, %v232_v45, 0.0 }
 0x119   : > { %v225_v51 = vadd.f32 %v613_v9, %v223_v48  ;;  %v226_v52 = vadd.f32 %v609_v10, %v224_v49 }
 0x11b   : > { %v235_v56 = vadd.f32 %v233_v53, %v225_v51  ;;  %v236_v57 = vadd.f32 %v234_v55, %v226_v52 }
 0x11d   : > { %237 = vrot.lane.b32.xlu0 %v235_v56, %s633_s22  ;;  %239 = vrot.lane.b32.xlu1 %v236_v57, %s633_s22 }
 0x121   : > { %247 = vrot.lane.b32.xlu0 %v235_v56, %s634_s23  ;;  %249 = vrot.lane.b32.xlu1 %v236_v57, %s634_s23 }
 0x125   : > { %177 = vrot.lane.b32.xlu0 %v175_v58, %s632_s21  ;;  %179 = vrot.lane.b32.xlu1 %v176_v59, %s632_s21 }
 0x129   : > { %187 = vrot.lane.b32.xlu0 %v175_v58, %s631_s1  ;;  %189 = vrot.lane.b32.xlu1 %v176_v59, %s631_s1 }
 0x12d   : > { %257 = vrot.lane.b32.xlu0 %v621_v7, %s632_s21  ;;  %259 = vrot.lane.b32.xlu1 %v617_v8, %s632_s21 }
 0x131   : > { %267 = vrot.lane.b32.xlu0 %v621_v7, %s631_s1  ;;  %269 = vrot.lane.b32.xlu1 %v617_v8, %s631_s1 }
 0x18f   : > { %v238_v60 = vpop.permute.xlu0 %237  ;;  %v240_v61 = vpop.permute.xlu1 %239 }
 0x190   : > { %v241_v63 = vsel %vm1200_vm6, %v238_v60, %v240_v61  ;;  %v242_v0 = vsel %vm1201_vm11, %v240_v61, %v238_v60  ;;  %vm1203_vm6 = vmmov %vm1202_vm4 }
 0x191   : > { %v243_v4 = vsel %vm762_vm9, %v242_v0, 0.0  ;;  %v244_v12 = vsel %vm770_vm10, %v241_v63, 0.0  ;;  %vm1204_vm11 = vmmov %vm1202_vm4 }
 0x192   : > { %v245_v15 = vadd.f32 %v243_v4, %v235_v56  ;;  %v246_v16 = vadd.f32 %v244_v12, %v236_v57 }
 0x193   : > { %v248_v13 = vpop.permute.xlu0 %247  ;;  %v250_v14 = vpop.permute.xlu1 %249 }
 0x194   : > { %v251_v17 = vsel %vm127_vm15, %v248_v13, %v250_v14  ;;  %v252_v18 = vsel %vm127_vm15, %v250_v14, %v248_v13 }
 0x195   : > { %v253_v19 = vsel %vm776_vm2, %v251_v17, 0.0  ;;  %v254_v20 = vsel %vm780_vm5, %v252_v18, 0.0 }
 0x196   : > { %v875_v21 = vadd.f32 %v253_v19, %v245_v15  ;;  %v877_v22 = vadd.f32 %v254_v20, %v246_v16 }
 0x197   : > { %v178_v23 = vpop.permute.xlu0 %177  ;;  %v180_v24 = vpop.permute.xlu1 %179 }
 0x198   : > { %vm297_vm12 = vcmp.eq.f32.partialorder %v875_v21, 0.0  ;;  %vm298_vm3 = vcmp.eq.f32.partialorder %v877_v22, 0.0  ;;  %v181_v25 = vsel %vm22_vm0, %v178_v23, %v180_v24  ;;  %v182_v26 = vsel %vm22_vm0, %v180_v24, %v178_v23 }
 0x199   : > { %v888_v28 = vsel %vm297_vm12, 0.0, %v635_v27  ;;  %v893_v30 = vsel %vm298_vm3, 0.0, %v635_v27  ;;  %v183_v31 = vsel %vm727_vm7, %v182_v26, 0.0  ;;  %v184_v2 = vsel %vm735_vm8, %v181_v25, 0.0 }
 0x19a   : > { %v569_v32 = vpack.i.bf16 %v893_v30, %v888_v28  ;;  %v185_v33 = vadd.f32 %v183_v31, %v175_v58  ;;  %v186_v34 = vadd.f32 %v184_v2, %v176_v59  ;;  %v299_v61 = vsel %vm297_vm12, 1.0, %v875_v21 }
 0x19b   : > { %v188_v35 = vpop.permute.xlu0 %187  ;;  %v190_v36 = vpop.permute.xlu1 %189  ;;  %v300_v63 = vsel %vm298_vm3, 1.0, %v877_v22  ;;  %579 = vrcp.f32 %v299_v61 }
 0x19c   : > { %v191_v37 = vsel %vm57_vm1, %v188_v35, %v190_v36  ;;  %v192_v38 = vsel %vm57_vm1, %v190_v36, %v188_v35  ;;  %570 = vrot.lane.b32.xlu0 %v569_v32, %s632_s21  ;;  %575 = vrot.lane.b32.xlu1 %v569_v32, %s631_s1  ;;  %581 = vrcp.f32 %v300_v63 }
 0x19d   : > { %v193_v39 = vsel %vm741_vm13, %v191_v37, 0.0  ;;  %v194_v3 = vsel %vm749_vm14, %v192_v38, 0.0 }
 0x19e   : > { %v195_v5 = vadd.f32 %v193_v39, %v185_v33  ;;  %v196_v42 = vadd.f32 %v194_v3, %v186_v34 }
 0x19f   : > { %v258_v43 = vpop.permute.xlu0 %257  ;;  %v260_v44 = vpop.permute.xlu1 %259 }
 0x1a0   : > { %v261_v45 = vsel %vm22_vm0, %v258_v43, %v260_v44  ;;  %v262_v46 = vsel %vm22_vm0, %v260_v44, %v258_v43  ;;  %197 = vrot.lane.b32.xlu0 %v195_v5, %s633_s22  ;;  %199 = vrot.lane.b32.xlu1 %v196_v42, %s633_s22 }
 0x1a1   : > { %v263_v47 = vsel %vm727_vm7, %v262_v46, -3e+38  ;;  %v264_v48 = vsel %vm735_vm8, %v261_v45, -3e+38 }
 0x1a2   : > { %v265_v49 = vmax.f32 %v621_v7, %v263_v47  ;;  %v266_v51 = vmax.f32 %v617_v8, %v264_v48 }
 0x1a3   : > { %v268_v52 = vpop.permute.xlu0 %267  ;;  %v270_v53 = vpop.permute.xlu1 %269 }
 0x1a4   : > { %v271_v55 = vsel %vm57_vm1, %v268_v52, %v270_v53  ;;  %v272_v56 = vsel %vm57_vm1, %v270_v53, %v268_v52  ;;  %207 = vrot.lane.b32.xlu0 %v195_v5, %s634_s23  ;;  %209 = vrot.lane.b32.xlu1 %v196_v42, %s634_s23 }
 0x1a5   : > { %v273_v57 = vsel %vm741_vm13, %v271_v55, -3e+38  ;;  %v274_v58 = vsel %vm749_vm14, %v272_v56, -3e+38 }
 0x1a6   : > { %v275_v59 = vmax.f32 %v265_v49, %v273_v57  ;;  %v276_v60 = vmax.f32 %v266_v51, %v274_v58 }
 0x1a8   : > { %277 = vrot.lane.b32.xlu0 %v275_v59, %s633_s22  ;;  %279 = vrot.lane.b32.xlu1 %v276_v60, %s633_s22  ;;  %v580_v55 = vpop.eup %579 }
 0x1a9   : > { %v582_v58 = vpop.eup %581 }
 0x1ac   : > { %287 = vrot.lane.b32.xlu0 %v275_v59, %s634_s23  ;;  %289 = vrot.lane.b32.xlu1 %v276_v60, %s634_s23 }
 0x20e   : > { %v571_v0 = vpop.permute.xlu0 %570  ;;  %v576_v13 = vpop.permute.xlu1 %575 }
 0x20f   : > { %v573_v4 = vunpack.i.h.bf16 %v571_v0  ;;  %v572_v12 = vunpack.i.l.bf16 %v571_v0  ;;  %v578_v14 = vunpack.i.h.bf16 %v576_v13  ;;  %v577_v15 = vunpack.i.l.bf16 %v576_v13 }
 0x211   : > { %v365_v16 = vsel %vm22_vm0, %v572_v12, %v573_v4  ;;  %v366_v17 = vsel %vm22_vm0, %v573_v4, %v572_v12  ;;  %v375_v20 = vsel %vm57_vm1, %v577_v15, %v578_v14  ;;  %v376_v23 = vsel %vm57_vm1, %v578_v14, %v577_v15 }
 0x212   : > { %v367_v18 = vsel %vm727_vm7, %v366_v17, 0.0  ;;  %v368_v19 = vsel %vm735_vm8, %v365_v16, 0.0  ;;  %v198_v24 = vpop.permute.xlu0 %197  ;;  %v200_v31 = vpop.permute.xlu1 %199  ;;  %v377_v2 = vsel %vm741_vm13, %v375_v20, 0.0  ;;  %v378_v32 = vsel %vm749_vm14, %v376_v23, 0.0 }
 0x213   : > { %v369_v25 = vadd.f32 %v367_v18, %v888_v28  ;;  %v370_v26 = vadd.f32 %v368_v19, %v893_v30  ;;  %v201_v33 = vsel %vm1202_vm4, %v198_v24, %v200_v31  ;;  %v202_v34 = vsel %vm1203_vm6, %v200_v31, %v198_v24 }
 0x214   : > { %v203_v37 = vsel %vm762_vm9, %v202_v34, 0.0  ;;  %v204_v38 = vsel %vm770_vm10, %v201_v33, 0.0  ;;  %vm311_vm6 = vcmp.ne.f32.partialorder %v613_v9, 0.0 }
 0x215   : > { %v965_v35 = vadd.f32 %v378_v32, %v370_v26  ;;  %v967_v36 = vadd.f32 %v377_v2, %v369_v25  ;;  %v205_v45 = vadd.f32 %v203_v37, %v195_v5  ;;  %v206_v46 = vadd.f32 %v204_v38, %v196_v42 }
 0x216   : > { %v208_v39 = vpop.permute.xlu0 %207  ;;  %v210_v3 = vpop.permute.xlu1 %209 }
 0x217   : > { %383 = vrot.lane.b32.xlu1 %v965_v35, %s633_s22  ;;  %381 = vrot.lane.b32.xlu0 %v967_v36, %s633_s22  ;;  %v211_v43 = vsel %vm127_vm15, %v208_v39, %v210_v3  ;;  %v212_v44 = vsel %vm127_vm15, %v210_v3, %v208_v39 }
 0x218   : > { %v213_v47 = vsel %vm776_vm2, %v211_v43, 0.0  ;;  %v214_v48 = vsel %vm780_vm5, %v212_v44, 0.0 }
 0x219   : > { %v215_v51 = vadd.f32 %v213_v47, %v205_v45  ;;  %v216_v52 = vadd.f32 %v214_v48, %v206_v46 }
 0x21a   : > { %v278_v49 = vpop.permute.xlu0 %277  ;;  %v280_v53 = vpop.permute.xlu1 %279 }
 0x21b   : > { %393 = vrot.lane.b32.xlu1 %v965_v35, %s634_s23  ;;  %391 = vrot.lane.b32.xlu0 %v967_v36, %s634_s23  ;;  %v281_v5 = vsel %vm1204_vm11, %v278_v49, %v280_v53  ;;  %v282_v42 = vsel %vm1202_vm4, %v280_v53, %v278_v49  ;;  %v303_v63 = vmul.f32 %v580_v55, %v215_v51  ;;  %vm312_vm11 = vcmp.ne.f32.partialorder %v609_v10, 0.0 }
 0x21c   : > { %v283_v56 = vsel %vm762_vm9, %v282_v42, -3e+38  ;;  %v284_v57 = vsel %vm770_vm10, %v281_v5, -3e+38  ;;  %v304_v0 = vmul.f32 %v582_v58, %v216_v52 }
 0x21d   : > { %v285_v12 = vmax.f32 %v275_v59, %v283_v56  ;;  %v286_v13 = vmax.f32 %v276_v60, %v284_v57  ;;  %v307_v20 = vmul.f32 0.4, %v303_v63 }
 0x21e   : > { %v288_v61 = vpop.permute.xlu0 %287  ;;  %v290_v4 = vpop.permute.xlu1 %289  ;;  %v308_v23 = vmul.f32 0.4, %v304_v0 }
 0x21f   : > { %v291_v14 = vsel %vm127_vm15, %v288_v61, %v290_v4  ;;  %v292_v15 = vsel %vm127_vm15, %v290_v4, %v288_v61 }
 0x220   : > { %v293_v16 = vsel %vm776_vm2, %v291_v14, -3e+38  ;;  %v294_v17 = vsel %vm780_vm5, %v292_v15, -3e+38 }
 0x221   : > { %v295_v18 = vmax.f32 %v285_v12, %v293_v16  ;;  %v296_v19 = vmax.f32 %v286_v13, %v294_v17 }
 0x223   : > { %v305_v24 = vmul.f32 0.6, %v295_v18  ;;  %v306_v25 = vmul.f32 0.6, %v296_v19 }
 0x225   : > { %v309_v59 = vadd.f32 %v307_v20, %v305_v24  ;;  %v310_v60 = vadd.f32 %v308_v23, %v306_v25 }
 0x227   : > { %v313_v26 = vsel %vm297_vm12, 0.0, %v309_v59  ;;  %v314_v31 = vsel %vm298_vm3, 0.0, %v310_v60  ;;  %vm1205_vm12 = vmmov %vm1202_vm4 }
 0x228   : > { %v1012_v2 = vsel %vm311_vm6, %v621_v7, %v313_v26  ;;  %v1015_v32 = vsel %vm312_vm11, %v617_v8, %v314_v31  ;;  %vm1206_vm3 = vmmov %vm1202_vm4 }
 0x229   : > { %v320_v33 = vmul.f32 %v893_v30, %v1015_v32  ;;  %v319_v9 = vmul.f32 %v888_v28, %v1012_v2  ;;  %vm1207_vm11 = vmmov %vm1206_vm3 }
 0x22b   : > { %323 = vrot.lane.b32.xlu1 %v320_v33, %s632_s21  ;;  %321 = vrot.lane.b32.xlu0 %v319_v9, %s632_s21 }
 0x22f   : > { %333 = vrot.lane.b32.xlu1 %v320_v33, %s631_s1  ;;  %331 = vrot.lane.b32.xlu0 %v319_v9, %s631_s1 }
 0x233   : > { %403 = vrot.lane.b32.xlu1 %v1015_v32, %s632_s21  ;;  %401 = vrot.lane.b32.xlu0 %v1012_v2, %s632_s21 }
 0x237   : > { %411 = vrot.lane.b32.xlu1 %v1012_v2, %s631_s1 }
 0x23b   : > { %413 = vrot.lane.b32.xlu1 %v1015_v32, %s631_s1 }
 0x289   : > { %v384_v7 = vpop.permute.xlu1 %383  ;;  %v382_v8 = vpop.permute.xlu0 %381 }
 0x28a   : > { %v385_v10 = vsel %vm1205_vm12, %v382_v8, %v384_v7  ;;  %v386_v21 = vsel %vm1206_vm3, %v384_v7, %v382_v8  ;;  %vm1208_vm12 = vmmov %vm1206_vm3 }
 0x28b   : > { %v387_v22 = vsel %vm762_vm9, %v386_v21, 0.0  ;;  %v388_v34 = vsel %vm770_vm10, %v385_v10, 0.0 }
 0x28c   : > { %v389_v39 = vadd.f32 %v387_v22, %v967_v36  ;;  %v390_v3 = vadd.f32 %v388_v34, %v965_v35 }
 0x28d   : > { %v394_v37 = vpop.permute.xlu1 %393  ;;  %v392_v38 = vpop.permute.xlu0 %391 }
 0x28e   : > { %v395_v43 = vsel %vm127_vm15, %v392_v38, %v394_v37  ;;  %v396_v44 = vsel %vm127_vm15, %v394_v37, %v392_v38 }
 0x28f   : > { %v397_v45 = vsel %vm776_vm2, %v395_v43, 0.0  ;;  %v398_v46 = vsel %vm780_vm5, %v396_v44, 0.0 }
 0x290   : > { %v1051_v47 = vadd.f32 %v397_v45, %v389_v39  ;;  %v1053_v48 = vadd.f32 %v398_v46, %v390_v3 }
 0x292   : > { %vm441_vm4 = vcmp.eq.f32.partialorder %v1051_v47, 0.0  ;;  %vm442_vm6 = vcmp.eq.f32.partialorder %v1053_v48, 0.0  ;;  %v463_v35 = vmin.f32 %v1051_v47, %v1053_v48 }
 0x293   : > { %v1062_v36 = vsel %vm441_vm4, 0.0, %v635_v27   ;;  %v1067_v10 = vsel %vm442_vm6, 0.0, %v635_v27   ;;  %v443_v22 = vsel %vm441_vm4, 1.0, %v1051_v47  ;;  %v444_v34 = vsel %vm442_vm6, 1.0, %v1053_v48 }
 0x294   : > { %464 = vmin.xlane.f32.xlu0 %v463_v35  ;;  %583 = vrcp.f32 %v443_v22 }
 0x295   : > { %585 = vrcp.f32 %v444_v34 }
 0x29d   : > { %v324_v49 = vpop.permute.xlu1 %323  ;;  %v322_v51 = vpop.permute.xlu0 %321 }
 0x29e   : > { %v326_v52 = vsel %vm22_vm0, %v324_v49, %v322_v51  ;;  %v325_v5 = vsel %vm22_vm0, %v322_v51, %v324_v49 }
 0x29f   : > { %v327_v53 = vsel %vm727_vm7, %v326_v52, 0.0  ;;  %v328_v58 = vsel %vm735_vm8, %v325_v5, 0.0 }
 0x2a0   : > { %v329_v56 = vadd.f32 %v327_v53, %v319_v9  ;;  %v330_v13 = vadd.f32 %v328_v58, %v320_v33 }
 0x2a1   : > { %v334_v42 = vpop.permute.xlu1 %333  ;;  %v332_v55 = vpop.permute.xlu0 %331 }
 0x2a2   : > { %v335_v57 = vsel %vm57_vm1, %v332_v55, %v334_v42  ;;  %v336_v27 = vsel %vm57_vm1, %v334_v42, %v332_v55 }
 0x2a3   : > { %v337_v61 = vsel %vm741_vm13, %v335_v57, 0.0  ;;  %v338_v0 = vsel %vm749_vm14, %v336_v27, 0.0 }
 0x2a4   : > { %v339_v63 = vadd.f32 %v337_v61, %v329_v56  ;;  %v340_v14 = vadd.f32 %v338_v0, %v330_v13 }
 0x2a5   : > { %v404_v4 = vpop.permute.xlu1 %403  ;;  %v402_v12 = vpop.permute.xlu0 %401 }
 0x2a6   : > { %341 = vrot.lane.b32.xlu1 %v339_v63, %s633_s22  ;;  %v406_v15 = vsel %vm22_vm0, %v404_v4, %v402_v12  ;;  %v405_v24 = vsel %vm22_vm0, %v402_v12, %v404_v4  ;;  %v584_v12 = vpop.eup %583 }
 0x2a7   : > { %v407_v17 = vsel %vm727_vm7, %v406_v15, -3e+38  ;;  %v408_v60 = vsel %vm735_vm8, %v405_v24, -3e+38 }
 0x2a8   : > { %v409_v19 = vmax.f32 %v1012_v2, %v407_v17  ;;  %v410_v31 = vmax.f32 %v1015_v32, %v408_v60 }
 0x2a9   : > { %v412_v16 = vpop.permute.xlu1 %411 }
 0x2aa   : > { %343 = vrot.lane.b32.xlu1 %v340_v14, %s633_s22 }
 0x2ad   : > { %v414_v18 = vpop.permute.xlu1 %413 }
 0x2ae   : > { %v415_v20 = vsel %vm57_vm1, %v412_v16, %v414_v18  ;;  %351 = vrot.lane.b32.xlu1 %v339_v63, %s634_s23  ;;  %v416_v59 = vsel %vm57_vm1, %v414_v18, %v412_v16  ;;  %v586_v16 = vpop.eup %585 }
 0x2af   : > { %v417_v23 = vsel %vm741_vm13, %v415_v20, -3e+38  ;;  %v418_v26 = vsel %vm749_vm14, %v416_v59, -3e+38 }
 0x2b0   : > { %v419_v25 = vmax.f32 %v409_v19, %v417_v23  ;;  %v420_v33 = vmax.f32 %v410_v31, %v418_v26 }
 0x2b2   : > { %353 = vrot.lane.b32.xlu1 %v340_v14, %s634_s23  ;;  %431 = vrot.lane.b32.xlu0 %v419_v25, %s634_s23 }
 0x2b6   : > { %421 = vrot.lane.b32.xlu1 %v419_v25, %s633_s22 }
 0x2ba   : > { %423 = vrot.lane.b32.xlu1 %v420_v33, %s633_s22 }
 0x2be   : > { %433 = vrot.lane.b32.xlu1 %v420_v33, %s634_s23 }
 0x318   : > { %v342_v9 = vpop.permute.xlu1 %341 }
 0x31c   : > { %v344_v7 = vpop.permute.xlu1 %343 }
 0x31d   : > { %v465_v8 = vpop.xlane.xlu0 %464  ;;  %v345_v43 = vsel %vm1207_vm11, %v342_v9, %v344_v7  ;;  %v346_v44 = vsel %vm1208_vm12, %v344_v7, %v342_v9  ;;  %vm1209_vm11 = vmmov %vm1206_vm3  ;;  %vm455_vm12 = vcmp.ne.f32.partialorder %v888_v28, 0.0 }
 0x31e   : > { %v466_v21 = vrot.slane %v465_v8, 4  ;;  %v347_v51 = vsel %vm762_vm9, %v346_v44, 0.0  ;;  %v348_v52 = vsel %vm770_vm10, %v345_v43, 0.0 }
 0x31f   : > { %v349_v56 = vadd.f32 %v347_v51, %v339_v63  ;;  %v350_v57 = vadd.f32 %v348_v52, %v340_v14 }
 0x320   : > { %v467_v37 = vmin.f32 %v465_v8, %v466_v21  ;;  %v352_v38 = vpop.permute.xlu1 %351 }
 0x322   : > { %v468_v39 = vrot.slane %v467_v37, 2 }
 0x324   : > { %v469_v3 = vmin.f32 %v467_v37, %v468_v39  ;;  %v354_v45 = vpop.permute.xlu1 %353  ;;  %v432_v14 = vpop.permute.xlu0 %431 }
 0x325   : > { %v355_v35 = vsel %vm127_vm15, %v352_v38, %v354_v45  ;;  %v356_v49 = vsel %vm127_vm15, %v354_v45, %v352_v38 }
 0x326   : > { %v470_v46 = vrot.slane %v469_v3, 1  ;;  %v357_v42 = vsel %vm776_vm2, %v355_v35, 0.0  ;;  %v358_v55 = vsel %vm780_vm5, %v356_v49, 0.0 }
 0x327   : > { %v359_v27 = vadd.f32 %v357_v42, %v349_v56  ;;  %v360_v58 = vadd.f32 %v358_v55, %v350_v57 }
 0x328   : > { %v471_v53 = vmin.f32 %v469_v3, %v470_v46  ;;  %v422_v5 = vpop.permute.xlu1 %421 }
 0x329   : > { %v447_v17 = vmul.f32 %v584_v12, %v359_v27  ;;  %v448_v63 = vmul.f32 %v586_v16, %v360_v58 }
 0x32a   : > { %518 = vpush %v471_v53 }
 0x32b   : > { %v451_v9 = vmul.f32 0.4, %v447_v17  ;;  %v452_v7 = vmul.f32 0.4, %v448_v63 }
 0x32c   : > { %v424_v61 = vpop.permute.xlu1 %423 }
 0x32d   : > { %v425_v0 = vsel %vm1206_vm3, %v422_v5, %v424_v61  ;;  %v426_v4 = vsel %vm1209_vm11, %v424_v61, %v422_v5  ;;  %vm456_vm3 = vcmp.ne.f32.partialorder %v893_v30, 0.0 }
 0x32e   : > { %v427_v13 = vsel %vm762_vm9, %v426_v4, -3e+38  ;;  %v428_v15 = vsel %vm770_vm10, %v425_v0, -3e+38 }
 0x32f   : > { %v429_v19 = vmax.f32 %v419_v25, %v427_v13  ;;  %v430_v20 = vmax.f32 %v420_v33, %v428_v15 }
 0x330   : > { %v434_v18 = vpop.permute.xlu1 %433 }
 0x331   : > { %v435_v23 = vsel %vm127_vm15, %v432_v14, %v434_v18  ;;  %v436_v24 = vsel %vm127_vm15, %v434_v18, %v432_v14 }
 0x332   : > { %v437_v59 = vsel %vm776_vm2, %v435_v23, -3e+38  ;;  %v438_v60 = vsel %vm780_vm5, %v436_v24, -3e+38 }
 0x333   : > { %v439_v26 = vmax.f32 %v429_v19, %v437_v59  ;;  %v440_v31 = vmax.f32 %v430_v20, %v438_v60 }
 0x335   : > { %v449_v8 = vmul.f32 0.6, %v439_v26  ;;  %v450_v21 = vmul.f32 0.6, %v440_v31 }
 0x337   : > { %v453_v25 = vadd.f32 %v451_v9, %v449_v8  ;;  %v454_v33 = vadd.f32 %v452_v7, %v450_v21  ;;  %v1210_v9 = vmov %v1062_v36 }
 0x339   : > { %v457_v22 = vsel %vm441_vm4, 0.0, %v453_v25  ;;  %v458_v34 = vsel %vm442_vm6, 0.0, %v454_v33 }
 0x33a   : > { %v459_v37 = vsel %vm455_vm12, %v1012_v2, %v457_v22   ;;  %v460_v38 = vsel %vm456_vm3, %v1015_v32, %v458_v34  }
 0x33b   : > { %v1211_v8 = vmov %v460_v38  ;;  %v1212_v7 = vmov %v459_v37 }
 0x35b   : > { %s519_s25 = spop %518 }
 0x35c   : > { %p473_p0 = scmp.eq.f32.partialorder %s519_s25, 0.0 }
 0x35e   : > { %p171_p2 = pnand %p473_p0, %p169_p1 }
 0x35f   :  { %476 = vst [vmem:[%s1182_s2] sm:$0xff] (%p171_p2), %v459_v37  ;;  %477 = vst [vmem:[%s1182_s2 + $0x8] sm:$0xff] (%p171_p2), %v460_v38 }
 0x360   :  { %174 = sbr.rel (!%p171_p2) target bundleno = 159 (0x9f), region = 35 }

</bundles_post_ra>
